<compile_context>
chip_gen: v7x
topology: tpu7x:2x2x1
jax: 0.10.0
libtpu: 0.0.40
codegen_flags: <defaults>
</compile_context>

<pallas_src>
import math

import jax
import jax.numpy as jnp
from jax.experimental import pallas as pl
from jax.experimental.pallas import tpu as pltpu

EPS = 1e-5                      # nn.LayerNorm default
INV_SQRT2 = 0.7071067811865476  # 1/sqrt(2)


def _round_up(n, m):
    return ((n + m - 1) // m) * m


def _cdiv(a, b):
    return -(-a // b)


def _layernorm(x, gamma, beta):
    """LayerNorm over the last dim, f32, two-pass variance.

    Two-pass (mean, then mean of squared deviations) avoids the catastrophic
    cancellation of E[x^2]-E[x]^2 when |mean| >> std; the extra cross-lane
    reduction runs on the XLU, which has slack in this kernel.
    """
    mean = jnp.mean(x, axis=-1, keepdims=True)
    c = x - mean
    var = jnp.mean(c * c, axis=-1, keepdims=True)
    return c * jax.lax.rsqrt(var + EPS) * gamma + beta


def mlp_kernel(x_ref, w1_ref, b1_ref, g1_ref, be1_ref,
               w2_ref, b2_ref, g2_ref, be2_ref, o_ref):
    # fc1: cast the streamed f32 x tile to bf16 in-kernel (cheap VPU cast; no
    # wrapper-side pad/cast HBM pass), MXU matmul with f32 accumulation.
    x = x_ref[...].astype(jnp.bfloat16)
    h = jnp.dot(x, w1_ref[...], preferred_element_type=jnp.float32)
    h = h + b1_ref[...]

    # bn1 = LayerNorm(hidden)  (f32 epilogue; safe on v5e: no bf16 VPU/EUP)
    h = _layernorm(h, g1_ref[...], be1_ref[...])

    # act = exact-erf GELU (matches nn.GELU() default).
    # TODO(synk): tanh-approx GELU would move the transcendental to the EUP
    # slot (helps v5e) but changes numerics vs nn.GELU default, so keep erf.
    h = 0.5 * h * (1.0 + jax.lax.erf(h * INV_SQRT2))

    # drop1: p = 0.0 -> identity in forward.

    # fc2: bf16 operands, f32 accumulation.
    y = jnp.dot(h.astype(jnp.bfloat16), w2_ref[...],
                preferred_element_type=jnp.float32)
    y = y + b2_ref[...]

    # bn2 = LayerNorm(out)
    y = _layernorm(y, g2_ref[...], be2_ref[...])

    # drop2: identity.
    o_ref[...] = y.astype(o_ref.dtype)


def prepare_params(params):
    """One-time weight preparation, hoisted out of the per-call path.

    Cast matmul weights to bf16 and biases/LN params to f32 row vectors once;
    cache the result and reuse it for every mlp_pallas call so no per-call XLA
    pad/convert passes over the weights in HBM.
    """
    bf16, f32 = jnp.bfloat16, jnp.float32
    row = lambda a: a.reshape(1, -1).astype(f32)
    return {
        "w1": params["w1"].astype(bf16),
        "w2": params["w2"].astype(bf16),
        "b1": row(params["b1"]), "g1": row(params["g1"]), "be1": row(params["be1"]),
        "b2": row(params["b2"]), "g2": row(params["g2"]), "be2": row(params["be2"]),
    }


def _vmem_capacity_bytes():
    """Per-core VMEM capacity; conservative fallback = v7x's 64 MiB/TC."""
    try:
        info = pltpu.get_tpu_info()
        for attr in ("vmem_capacity_bytes", "vmem_bytes", "vmem_size_bytes"):
            v = getattr(info, attr, None)
            if v:
                return int(v)
    except Exception:
        pass
    return 64 * 1024 * 1024


def _vmem_footprint(tm, cin, h, cout, x_buffers):
    w = (cin * h + h * cout) * 2                   # bf16 weights, 1 buffer each
    vec = 3 * (h + cout) * 4                       # bias/gamma/beta rows, f32
    xin = x_buffers * tm * cin * 4                 # streamed f32 input tiles
    out = 2 * tm * cout * 4                        # double-buffered f32 out tiles
    inter = 2 * tm * (h * 4 + h * 2 + cout * 4)    # h (f32 + bf16), y, slack
    return w + vec + xin + out + inter + (4 << 20)  # + compiler scratch margin


def mlp_pallas(x2d, prep, *, tm=256, x_buffers=2):
    """x2d: (N, Cin) f32.  prep: prepare_params(...) output (cache and reuse).

    tm: desired row tile.  256 is a good default; sweep up to 512 on v6e
    (128 MiB VMEM); on v7x the adaptive shrink below re-derives it against the
    64 MiB/TC budget.  x_buffers: buffering depth of the streamed x tiles;
    raise to 3 if xprof shows exposed DMA at small Cin/Cout.
    """
    N, Cin = x2d.shape
    H = prep["w1"].shape[1]
    Cout = prep["w2"].shape[1]

    # Adaptive row tile: never pad far past N; keep >=2 grid steps when N
    # allows (software pipelining + megacore sharding).
    tm = min(tm, _round_up(N, 8))
    if _cdiv(N, tm) < 2 and N > 8:
        tm = _round_up(_cdiv(N, 2), 8)

    # Shrink tm until the footprint fits the per-core VMEM budget.
    vmem_cap = int(_vmem_capacity_bytes() * 0.85)
    while tm > 8 and _vmem_footprint(tm, Cin, H, Cout, x_buffers) > vmem_cap:
        tm = max(8, tm // 2)
    # TODO(synk): if the weights alone ((Cin*H + H*Cout)*2B) exceed ~1/3 of
    # vmem_cap (very large Cin/H on v7x), switch to a streamed-weight path:
    # inner pltpu.emit_pipeline K-tiling w1 over Cin and w2 over H into an f32
    # accumulator instead of pinning both weights resident.
    vmem_limit = max(min(_vmem_footprint(tm, Cin, H, Cout, x_buffers), vmem_cap),
                     16 << 20)

    grid = (_cdiv(N, tm),)

    # Resident (constant-index) operands never re-fetch: single-buffer them so
    # they don't cost 2x VMEM.
    resident = lambda shape: pl.BlockSpec(shape, lambda i: (0, 0),
                                          pipeline_mode=pl.Buffered(1))
    if x_buffers == 2:  # default pipeline depth
        x_spec = pl.BlockSpec((tm, Cin), lambda i: (i, 0))
    else:
        x_spec = pl.BlockSpec((tm, Cin), lambda i: (i, 0),
                              pipeline_mode=pl.Buffered(x_buffers))

    return pl.pallas_call(
        mlp_kernel,
        out_shape=jax.ShapeDtypeStruct((N, Cout), x2d.dtype),
        grid_spec=pltpu.PrefetchScalarGridSpec(
            num_scalar_prefetch=0,
            grid=grid,
            in_specs=[
                x_spec,                 # x row tile (streamed)
                resident((Cin, H)),     # w1
                resident((1, H)),       # b1
                resident((1, H)),       # ln1 gamma
                resident((1, H)),       # ln1 beta
                resident((H, Cout)),    # w2
                resident((1, Cout)),    # b2
                resident((1, Cout)),    # ln2 gamma
                resident((1, Cout)),    # ln2 beta
            ],
            # A partial last row block (N % tm != 0) is handled by Pallas'
            # masked boundary block: no wrapper-side row padding of x and no
            # output slicing pass over HBM.
            out_specs=pl.BlockSpec((tm, Cout), lambda i: (i, 0)),
        ),
        compiler_params=pltpu.CompilerParams(
            dimension_semantics=("parallel",),
            vmem_limit_bytes=int(vmem_limit),
        ),
    )(x2d, prep["w1"], prep["b1"], prep["g1"], prep["be1"],
      prep["w2"], prep["b2"], prep["g2"], prep["be2"])


def init_params(key, in_features, hidden_features):
    out_features = in_features  # module sets out_channels = in_features
    k1, k2, k3, k4 = jax.random.split(key, 4)
    # torch Linear init: U(-1/sqrt(fan_in), 1/sqrt(fan_in)); stored (in, out).
    lim1 = 1.0 / math.sqrt(in_features)
    lim2 = 1.0 / math.sqrt(hidden_features)
    return {
        "w1": jax.random.uniform(k1, (in_features, hidden_features), jnp.float32, -lim1, lim1),
        "b1": jax.random.uniform(k2, (1, hidden_features), jnp.float32, -lim1, lim1),
        "g1": jnp.ones((1, hidden_features), jnp.float32),
        "be1": jnp.zeros((1, hidden_features), jnp.float32),
        "w2": jax.random.uniform(k3, (hidden_features, out_features), jnp.float32, -lim2, lim2),
        "b2": jax.random.uniform(k4, (1, out_features), jnp.float32, -lim2, lim2),
        "g2": jnp.ones((1, out_features), jnp.float32),
        "be2": jnp.zeros((1, out_features), jnp.float32),
    }


def _layernorm_ref(x, gamma, beta):
    mean = jnp.mean(x, axis=-1, keepdims=True)
    var = jnp.mean((x - mean) ** 2, axis=-1, keepdims=True)
    return (x - mean) * jax.lax.rsqrt(var + EPS) * gamma + beta


def mlp_reference(x2d, p):
    """Reference using the same bf16-operand / f32-accumulate matmul contract."""
    f32 = jnp.float32
    xb = x2d.astype(jnp.bfloat16).astype(f32)
    w1 = p["w1"].astype(jnp.bfloat16).astype(f32)
    w2 = p["w2"].astype(jnp.bfloat16).astype(f32)
    h = xb @ w1 + p["b1"]
    h = _layernorm_ref(h, p["g1"], p["be1"])
    h = 0.5 * h * (1.0 + jax.lax.erf(h * INV_SQRT2))
    hb = h.astype(jnp.bfloat16).astype(f32)
    y = hb @ w2 + p["b2"]
    return _layernorm_ref(y, p["g2"], p["be2"])


if __name__ == "__main__":
    key = jax.random.PRNGKey(0)
    kx, kp = jax.random.split(key)

    B, S, Cin, Hdim = 2, 8, 32, 64   # small demo: batch=2, seq=8, in=32, hidden=64
    x = jax.random.normal(kx, (B, S, Cin), jnp.float32)
    params = init_params(kp, Cin, Hdim)

    # Hoisted one-time weight cast (cache this in real use; reuse every call).
    prep = prepare_params(params)

    x2d = x.reshape(B * S, Cin)
    out2d = mlp_pallas(x2d, prep, tm=256)
    jax.block_until_ready(out2d)

    Cout = params["w2"].shape[1]
    assert Cout == Cin, "module sets out_channels == in_features"
    out = out2d.reshape(B, S, Cout)

    ref = mlp_reference(x2d, params)
    assert out2d.shape == ref.shape
    assert jnp.allclose(out2d, ref, atol=1e-2, rtol=1e-2), "mismatch vs reference"

    print("KERNEL_OK")
</pallas_src>

<mosaic_0001>
module attributes {stable_mosaic.version = 11 : i64} {
  func.func @mlp_kernel(%arg0: i32, %arg1: memref<8x32xf32, #tpu.memory_space<vmem>>, %arg2: memref<32x64xbf16, #tpu.memory_space<vmem>>, %arg3: memref<1x64xf32, #tpu.memory_space<vmem>>, %arg4: memref<1x64xf32, #tpu.memory_space<vmem>>, %arg5: memref<1x64xf32, #tpu.memory_space<vmem>>, %arg6: memref<64x32xbf16, #tpu.memory_space<vmem>>, %arg7: memref<1x32xf32, #tpu.memory_space<vmem>>, %arg8: memref<1x32xf32, #tpu.memory_space<vmem>>, %arg9: memref<1x32xf32, #tpu.memory_space<vmem>>, %arg10: memref<8x32xf32, #tpu.memory_space<vmem>>) attributes {dimension_semantics = [#tpu.dimension_semantics<parallel>], iteration_bounds = array<i64: 2>, scalar_prefetch = 0 : i64, scratch_operands = 0 : i64, tpu.core_type = #tpu.core_type<tc>, window_params = [{transform_indices = @transform_0, window_bounds = array<i64: 8, 32>}, {pipeline_mode = #tpu.pipeline_mode<synchronous>, transform_indices = @transform_1, window_bounds = array<i64: 32, 64>}, {pipeline_mode = #tpu.pipeline_mode<synchronous>, transform_indices = @transform_2, window_bounds = array<i64: 1, 64>}, {pipeline_mode = #tpu.pipeline_mode<synchronous>, transform_indices = @transform_3, window_bounds = array<i64: 1, 64>}, {pipeline_mode = #tpu.pipeline_mode<synchronous>, transform_indices = @transform_4, window_bounds = array<i64: 1, 64>}, {pipeline_mode = #tpu.pipeline_mode<synchronous>, transform_indices = @transform_5, window_bounds = array<i64: 64, 32>}, {pipeline_mode = #tpu.pipeline_mode<synchronous>, transform_indices = @transform_6, window_bounds = array<i64: 1, 32>}, {pipeline_mode = #tpu.pipeline_mode<synchronous>, transform_indices = @transform_7, window_bounds = array<i64: 1, 32>}, {pipeline_mode = #tpu.pipeline_mode<synchronous>, transform_indices = @transform_8, window_bounds = array<i64: 1, 32>}, {transform_indices = @transform_9, window_bounds = array<i64: 8, 32>}]} {
    %c0 = arith.constant 0 : index
    %c0_0 = arith.constant 0 : index
    %0 = vector.load %arg1[%c0, %c0_0] : memref<8x32xf32, #tpu.memory_space<vmem>>, vector<8x32xf32>
    %1 = arith.truncf %0 : vector<8x32xf32> to vector<8x32xbf16>
    %c0_1 = arith.constant 0 : index
    %c0_2 = arith.constant 0 : index
    %2 = vector.load %arg2[%c0_1, %c0_2] : memref<32x64xbf16, #tpu.memory_space<vmem>>, vector<32x64xbf16>
    %cst = arith.constant dense<0.000000e+00> : vector<8x64xf32>
    %3 = tpu.matmul %1, %2, %cst {dimension_numbers = #tpu.dot_dimension_numbers<[1], [0], [0], [1], [0, 0, 1, 1], [], []>} : vector<8x32xbf16>, vector<32x64xbf16>, vector<8x64xf32> -> vector<8x64xf32>
    %c0_3 = arith.constant 0 : index
    %c0_4 = arith.constant 0 : index
    %4 = vector.load %arg3[%c0_3, %c0_4] : memref<1x64xf32, #tpu.memory_space<vmem>>, vector<1x64xf32>
    %5 = vector.broadcast %4 : vector<1x64xf32> to vector<8x64xf32>
    %6 = arith.addf %3, %5 : vector<8x64xf32>
    %c0_5 = arith.constant 0 : index
    %c0_6 = arith.constant 0 : index
    %7 = vector.load %arg4[%c0_5, %c0_6] : memref<1x64xf32, #tpu.memory_space<vmem>>, vector<1x64xf32>
    %c0_7 = arith.constant 0 : index
    %c0_8 = arith.constant 0 : index
    %8 = vector.load %arg5[%c0_7, %c0_8] : memref<1x64xf32, #tpu.memory_space<vmem>>, vector<1x64xf32>
    %cst_9 = arith.constant dense<0.000000e+00> : vector<8xf32>
    %9 = vector.multi_reduction <add>, %6, %cst_9 [1] : vector<8x64xf32> to vector<8xf32>
    %10 = vector.shape_cast %9 : vector<8xf32> to vector<8x1xf32>
    %cst_10 = arith.constant 6.400000e+01 : f32
    %11 = vector.broadcast %cst_10 : f32 to vector<8x1xf32>
    %12 = arith.divf %10, %11 : vector<8x1xf32>
    %13 = vector.broadcast %12 : vector<8x1xf32> to vector<8x64xf32>
    %14 = arith.subf %6, %13 : vector<8x64xf32>
    %15 = arith.mulf %14, %14 : vector<8x64xf32>
    %cst_11 = arith.constant dense<0.000000e+00> : vector<8xf32>
    %16 = vector.multi_reduction <add>, %15, %cst_11 [1] : vector<8x64xf32> to vector<8xf32>
    %17 = vector.shape_cast %16 : vector<8xf32> to vector<8x1xf32>
    %cst_12 = arith.constant 6.400000e+01 : f32
    %18 = vector.broadcast %cst_12 : f32 to vector<8x1xf32>
    %19 = arith.divf %17, %18 : vector<8x1xf32>
    %cst_13 = arith.constant 9.99999974E-6 : f32
    %20 = vector.broadcast %cst_13 : f32 to vector<8x1xf32>
    %21 = arith.addf %19, %20 : vector<8x1xf32>
    %22 = math.rsqrt %21 : vector<8x1xf32>
    %23 = vector.broadcast %22 : vector<8x1xf32> to vector<8x64xf32>
    %24 = arith.mulf %14, %23 : vector<8x64xf32>
    %25 = vector.broadcast %7 : vector<1x64xf32> to vector<8x64xf32>
    %26 = arith.mulf %24, %25 : vector<8x64xf32>
    %27 = vector.broadcast %8 : vector<1x64xf32> to vector<8x64xf32>
    %28 = arith.addf %26, %27 : vector<8x64xf32>
    %cst_14 = arith.constant 5.000000e-01 : f32
    %29 = vector.broadcast %cst_14 : f32 to vector<8x64xf32>
    %30 = arith.mulf %29, %28 : vector<8x64xf32>
    %cst_15 = arith.constant 0.707106769 : f32
    %31 = vector.broadcast %cst_15 : f32 to vector<8x64xf32>
    %32 = arith.mulf %28, %31 : vector<8x64xf32>
    %33 = math.erf %32 : vector<8x64xf32>
    %cst_16 = arith.constant 1.000000e+00 : f32
    %34 = vector.broadcast %cst_16 : f32 to vector<8x64xf32>
    %35 = arith.addf %34, %33 : vector<8x64xf32>
    %36 = arith.mulf %30, %35 : vector<8x64xf32>
    %37 = arith.truncf %36 : vector<8x64xf32> to vector<8x64xbf16>
    %c0_17 = arith.constant 0 : index
    %c0_18 = arith.constant 0 : index
    %38 = vector.load %arg6[%c0_17, %c0_18] : memref<64x32xbf16, #tpu.memory_space<vmem>>, vector<64x32xbf16>
    %cst_19 = arith.constant dense<0.000000e+00> : vector<8x32xf32>
    %39 = tpu.matmul %37, %38, %cst_19 {dimension_numbers = #tpu.dot_dimension_numbers<[1], [0], [0], [1], [0, 0, 1, 1], [], []>} : vector<8x64xbf16>, vector<64x32xbf16>, vector<8x32xf32> -> vector<8x32xf32>
    %c0_20 = arith.constant 0 : index
    %c0_21 = arith.constant 0 : index
    %40 = vector.load %arg7[%c0_20, %c0_21] : memref<1x32xf32, #tpu.memory_space<vmem>>, vector<1x32xf32>
    %41 = vector.broadcast %40 : vector<1x32xf32> to vector<8x32xf32>
    %42 = arith.addf %39, %41 : vector<8x32xf32>
    %c0_22 = arith.constant 0 : index
    %c0_23 = arith.constant 0 : index
    %43 = vector.load %arg8[%c0_22, %c0_23] : memref<1x32xf32, #tpu.memory_space<vmem>>, vector<1x32xf32>
    %c0_24 = arith.constant 0 : index
    %c0_25 = arith.constant 0 : index
    %44 = vector.load %arg9[%c0_24, %c0_25] : memref<1x32xf32, #tpu.memory_space<vmem>>, vector<1x32xf32>
    %cst_26 = arith.constant dense<0.000000e+00> : vector<8xf32>
    %45 = vector.multi_reduction <add>, %42, %cst_26 [1] : vector<8x32xf32> to vector<8xf32>
    %46 = vector.shape_cast %45 : vector<8xf32> to vector<8x1xf32>
    %cst_27 = arith.constant 3.200000e+01 : f32
    %47 = vector.broadcast %cst_27 : f32 to vector<8x1xf32>
    %48 = arith.divf %46, %47 : vector<8x1xf32>
    %49 = vector.broadcast %48 : vector<8x1xf32> to vector<8x32xf32>
    %50 = arith.subf %42, %49 : vector<8x32xf32>
    %51 = arith.mulf %50, %50 : vector<8x32xf32>
    %cst_28 = arith.constant dense<0.000000e+00> : vector<8xf32>
    %52 = vector.multi_reduction <add>, %51, %cst_28 [1] : vector<8x32xf32> to vector<8xf32>
    %53 = vector.shape_cast %52 : vector<8xf32> to vector<8x1xf32>
    %cst_29 = arith.constant 3.200000e+01 : f32
    %54 = vector.broadcast %cst_29 : f32 to vector<8x1xf32>
    %55 = arith.divf %53, %54 : vector<8x1xf32>
    %cst_30 = arith.constant 9.99999974E-6 : f32
    %56 = vector.broadcast %cst_30 : f32 to vector<8x1xf32>
    %57 = arith.addf %55, %56 : vector<8x1xf32>
    %58 = math.rsqrt %57 : vector<8x1xf32>
    %59 = vector.broadcast %58 : vector<8x1xf32> to vector<8x32xf32>
    %60 = arith.mulf %50, %59 : vector<8x32xf32>
    %61 = vector.broadcast %43 : vector<1x32xf32> to vector<8x32xf32>
    %62 = arith.mulf %60, %61 : vector<8x32xf32>
    %63 = vector.broadcast %44 : vector<1x32xf32> to vector<8x32xf32>
    %64 = arith.addf %62, %63 : vector<8x32xf32>
    %c0_31 = arith.constant 0 : index
    %c0_32 = arith.constant 0 : index
    %65 = vector.load %arg10[%c0_31, %c0_32] : memref<8x32xf32, #tpu.memory_space<vmem>>, vector<8x32xf32>
    tpu.vector_store %arg10[%c0_31, %c0_32], %64 {strides = array<i32>} : memref<8x32xf32, #tpu.memory_space<vmem>>, vector<8x32xf32>,
    return
  }
  func.func @transform_0(%arg0: i32) -> (i32, i32) {
    %c0_i32 = arith.constant 0 : i32
    %c0_i32_0 = arith.constant 0 : i32
    return %arg0, %c0_i32 : i32, i32
  }
  func.func @transform_1(%arg0: i32) -> (i32, i32) {
    %c0_i32 = arith.constant 0 : i32
    %c0_i32_0 = arith.constant 0 : i32
    %c0_i32_1 = arith.constant 0 : i32
    return %c0_i32, %c0_i32_0 : i32, i32
  }
  func.func @transform_2(%arg0: i32) -> (i32, i32) {
    %c0_i32 = arith.constant 0 : i32
    %c0_i32_0 = arith.constant 0 : i32
    %c0_i32_1 = arith.constant 0 : i32
    return %c0_i32, %c0_i32_0 : i32, i32
  }
  func.func @transform_3(%arg0: i32) -> (i32, i32) {
    %c0_i32 = arith.constant 0 : i32
    %c0_i32_0 = arith.constant 0 : i32
    %c0_i32_1 = arith.constant 0 : i32
    return %c0_i32, %c0_i32_0 : i32, i32
  }
  func.func @transform_4(%arg0: i32) -> (i32, i32) {
    %c0_i32 = arith.constant 0 : i32
    %c0_i32_0 = arith.constant 0 : i32
    %c0_i32_1 = arith.constant 0 : i32
    return %c0_i32, %c0_i32_0 : i32, i32
  }
  func.func @transform_5(%arg0: i32) -> (i32, i32) {
    %c0_i32 = arith.constant 0 : i32
    %c0_i32_0 = arith.constant 0 : i32
    %c0_i32_1 = arith.constant 0 : i32
    return %c0_i32, %c0_i32_0 : i32, i32
  }
  func.func @transform_6(%arg0: i32) -> (i32, i32) {
    %c0_i32 = arith.constant 0 : i32
    %c0_i32_0 = arith.constant 0 : i32
    %c0_i32_1 = arith.constant 0 : i32
    return %c0_i32, %c0_i32_0 : i32, i32
  }
  func.func @transform_7(%arg0: i32) -> (i32, i32) {
    %c0_i32 = arith.constant 0 : i32
    %c0_i32_0 = arith.constant 0 : i32
    %c0_i32_1 = arith.constant 0 : i32
    return %c0_i32, %c0_i32_0 : i32, i32
  }
  func.func @transform_8(%arg0: i32) -> (i32, i32) {
    %c0_i32 = arith.constant 0 : i32
    %c0_i32_0 = arith.constant 0 : i32
    %c0_i32_1 = arith.constant 0 : i32
    return %c0_i32, %c0_i32_0 : i32, i32
  }
  func.func @transform_9(%arg0: i32) -> (i32, i32) {
    %c0_i32 = arith.constant 0 : i32
    %c0_i32_0 = arith.constant 0 : i32
    return %arg0, %c0_i32 : i32, i32
  }
}

</mosaic_0001>

<bundles_post_ra>
// kernel: tpu_custom_call.1
= control target key start
LH: loop header
LB: loop body
LE: loop exit
PB: predicated region body
PF: predicated region fallthrough
CT: control target
= control target key end

     0   :  { %14 = vsyncpa [#allocation3], 0  ;;  %s986_s0 = inlined_call_operand.vmem [shape: f32[16,32], index: 0, kind: input, shape index: {}]   ;;  %s987_s1 = inlined_call_operand.vmem [shape: bf16[32,64], index: 1, kind: input, shape index: {}]   ;;  %s988_s2 = inlined_call_operand.vmem [shape: f32[1,64], index: 2, kind: input, shape index: {}]   ;;  %s989_s3 = inlined_call_operand.vmem [shape: f32[1,64], index: 3, kind: input, shape index: {}]   ;;  %s990_s4 = inlined_call_operand.vmem [shape: f32[1,64], index: 4, kind: input, shape index: {}]   ;;  %s991_s5 = inlined_call_operand.vmem [shape: bf16[64,32], index: 5, kind: input, shape index: {}]   ;;  %s992_s6 = inlined_call_operand.vmem [shape: f32[1,32], index: 6, kind: input, shape index: {}]   ;;  %s993_s7 = inlined_call_operand.vmem [shape: f32[1,32], index: 7, kind: input, shape index: {}]   ;;  %s994_s8 = inlined_call_operand.vmem [shape: f32[1,32], index: 8, kind: input, shape index: {}]   ;;  %s995_s9 = inlined_call_operand.hbm [shape: f32[16,32], index: 9, kind: output, shape index: {}]  }
   0x1   :  { %16 = vsyncpa [#allocation3 + $0x1], 0  ;;  %s843_s30 = smov 0   ;;  %s845_s10 = smov 0  }
   0x2   :  { %s847_s11 = smov 0   ;;  %s849_s12 = smov 0  }
   0x3 LB: > { %s864_s13 = sadd.s32 4294967295, %s788_s12   ;;  %s621_s14 = sadd.s32 4294967294, %s788_s12   ;;  %s788_s12 = sphi %s849_s12, %s1001_s12   ;;  %s784_s11 = sphi %s847_s11, %s1000_s11   ;;  %s780_s10 = sphi %s845_s10, %s999_s10   ;;  %s776_s30 = sphi %s843_s30, %s998_s30  }
   0x4   : > { %s868_s15 = sadd.s32 1, %s788_s12   ;;  %s223_s16 = sadd.s32 1, %s784_s11 }
   0x5   : > { %s220_s17 = ssub.s32 %s788_s12, %s868_s15  ;;  %p233_p0 = scmp.ne.s32.totalorder %s784_s11, %s780_s10 }
   0x6   : > { %p221_p1 = scmp.eq.s32.totalorder %s220_s17, 0  ;;  %p234_p2 = scmp.eq.s32.totalorder %s864_s13, 1 }
   0x7   : > { %p239_p3 = scmp.ne.s32.totalorder %s780_s10, %s776_s30  ;;  %p240_p4 = scmp.eq.s32.totalorder %s621_s14, 1 }
   0x8   : > { %s879_s18 = scalar_select %p221_p1, %s784_s11, %s223_s16  }
   0x9   : > { %p881_p5 = por %p234_p2, %p233_p0  ;;  %p885_p6 = por %p240_p4, %p239_p3 }
   0xa   : > { %p624_p7 = scmp.ge.s32.totalorder %s788_s12, 1  ;;  %p289_p8 = scmp.lt.s32.totalorder %s788_s12, 3 }
   0xc   : > { %p290_p9 = pnand %p624_p7, %p289_p8 }
   0xd   : > { %v714_v0 = vld [vmem:[%s987_s1] sm:$0xff] (!%p290_p9)   ;;  %v790_v1 = vmov (!%p290_p9), 0.0   ;;  %v715_v2 = vld [vmem:[%s987_s1 + $0x8] sm:$0xff] (!%p290_p9)   ;;  %vm791_vm0 = vmmov (!%p290_p9), 0   ;;  %p324_p10 = scmp.lt.s32.totalorder (!%p290_p9), %s864_s13, 1  ;;  %vm354_vm1 = vcmask (!%p290_p9), 261120  }
   0xe   : > { %293 = sbr.rel (%p290_p9) target bundleno = 1115 (0x45b), region = 56  ;;  %653 = vmatprep.subr.bf16.mxu0 (!%p290_p9), %v790_v1  ;;  %661 = vmatprep.subr.bf16.mxu1 (!%p290_p9), %v790_v1  ;;  %v627_v5 = vld [vmem:[%s988_s2] ss:$0 sm:$0xff] (!%p290_p9)  ;;  %vm400_vm2 = vcmask (!%p290_p9), 523264   ;;  %v717_v18 = vld [vmem:[%s991_s5 + $0x8] sm:$0xff] (!%p290_p9)   ;;  %v718_v19 = vld [vmem:[%s991_s5 + $0x10] sm:$0xff] (!%p290_p9)  }
   0xf   : > { %654 = vmatpush3.bf16.msra.mxu0 (!%p290_p9), %v714_v0  ;;  %657 = vmatprep.mubr.msk.bf16.mxu0 (!%p290_p9), %vm791_vm0, %v790_v1  ;;  %v716_v17 = vld [vmem:[%s991_s5] sm:$0xff] (!%p290_p9)   ;;  %v719_v20 = vld [vmem:[%s991_s5 + $0x18] sm:$0xff] (!%p290_p9)   ;;  %s321_s22 = sand.u32 (!%p290_p9), 1, %s780_s10   ;;  %s642_s28 = sshll.u32 (!%p290_p9), %s864_s13, 7 }
  0x10   : > { %655 = vmatprep.subr.bf16.mxu0 (!%p290_p9), %v790_v1  ;;  %669 = vmatprep.mubr.msk.bf16.mxu1 (!%p290_p9), %vm791_vm0, %v790_v1  ;;  %v631_v25 = vld [vmem:[%s989_s3] ss:$0 sm:$0xff] (!%p290_p9)  ;;  %s625_s23 = sshll.u32 (!%p290_p9), %s321_s22, 3  ;;  %s943_s21 = scalar_lea.hbm (!%p290_p9), %s995_s9, %s642_s28 }
  0x11   : > { %662 = vmatpush3.bf16.msra.mxu1 (!%p290_p9), %v716_v17  ;;  %v632_v27 = vld [vmem:[%s990_s4] ss:$0 sm:$0xff] (!%p290_p9)  ;;  %s549_s24 = scalar_lea.sflag (!%p290_p9), [#allocation3], %s321_s22 }
  0x12   : > { %663 = vmatprep.subr.bf16.mxu1 (!%p290_p9), %v790_v1  ;;  %v633_v36 = vld [vmem:[%s992_s6] ss:$0 sm:$0xff] (!%p290_p9) }
  0x13   : > { %656 = vmatpush3.bf16.msra.mxu0 (!%p290_p9), %v715_v2  ;;  %v639_v52 = vld [vmem:[%s993_s7] ss:$0 sm:$0xff] (!%p290_p9) }
  0x14   : > { %v640_v54 = vld [vmem:[%s994_s8] ss:$0 sm:$0xff] (!%p290_p9) }
  0x15   : > { %s325_s25 = scalar_select %p324_p10, %s864_s13, 1  ;;  %664 = vmatpush3.bf16.msra.mxu1 %v717_v18 }
  0x16   : > { %665 = vmatprep.subr.bf16.mxu1 %v790_v1  ;;  %s792_s13 = smov [#allocation2]  }
  0x17   : > { %s626_s26 = sshll.u32 %s325_s25, 3 }
  0x18   : > { %s327_s29 = scalar_lea.vmem %s986_s0, %s626_s26 }
  0x19   : > { %v329_v3 = vld [vmem:[%s327_s29] sm:$0xff]  ;;  %666 = vmatpush3.bf16.msra.mxu1 %v718_v19  ;;  %s323_s29 = scalar_lea.vmem [#allocation2], %s625_s23  ;;  %s730_s23 = sshll.u32 %s792_s13, 4  ;;  %s731_s23 = int_to_ptr.vmem [resolvable:$false] %s730_s23 }
  0x1a   : > { %v330_v4 = vpack.c.bf16 %v329_v3, %v329_v3  ;;  %667 = vmatprep.subr.bf16.mxu1 %v790_v1  ;;  %s562_s14 = sshll.u32 %s323_s29, 4  ;;  %s732_s26 = scalar_lea.vmem %s731_s23, 256  ;;  %s945_s14 = int_to_ptr.vmem [resolvable:$true] %s562_s14 }
  0x1b   : > { %s726_s25 = scalar_lea.vmem %s945_s14, 128  ;;  %p733_p0 = scmp.lt.s32.totalorder %s945_s14, %s731_s23 }
  0x1c   : > { %658 = vmatmul.mubr.msk.bf16.vlgmr.msra.gmra.mrb[0].mxu0 %vm354_vm1, %v330_v4  ;;  %p727_p11 = scmp.ne.s32.totalorder %s945_s14, %s726_s25  ;;  %p734_p1 = scmp.lt.s32.totalorder %s732_s26, %s726_s25 }
  0x1d   : > { %668 = vmatpush3.bf16.msra.mxu1 %v719_v20 }
  0x1e   : > { %p728_p12 = pnand %p727_p11, %p881_p5  ;;  %p735_p2 = por %p734_p1, %p733_p0 }
  0x20   : > { %p729_p13 = pneg %p728_p12 }
  0x22   : > { %p736_p3 = pnand %p735_p2, %p729_p13 }
  0xef   : > { %v392_v6 = vpop.f32.mrb[0].mxu0 }
  0xf0   : > { %v393_v7 = vadd.f32 %v627_v5, %v392_v6  ;;  %v659_v8 = vpop.f32.mrb[1].mxu0 }
  0xf1   : > { %v395_v9 = vpop.f32.mrb[2].mxu0 }
  0xf2   : > { %v660_v10 = vpop.f32.mrb[3].mxu0  ;;  %v401_v11 = vsel %vm400_vm2, %v393_v7, 0.0 }
  0xf3   : > { %402 = vadd.xlane.f32.xlu0 %v401_v11 }
 0x180   : > { %v403_v12 = vpop.xlane.xlu0 %402 }
 0x181   : > { %v405_v13 = vmul.f32 0.015625, %v403_v12 }
 0x183   : > { %v406_v14 = vsub.f32 %v393_v7, %v405_v13 }
 0x185   : > { %v407_v15 = vmul.f32 %v406_v14, %v406_v14 }
 0x187   : > { %v408_v16 = vsel %vm400_vm2, %v407_v15, 0.0 }
 0x188   : > { %409 = vadd.xlane.f32.xlu0 %v408_v16 }
 0x215   : > { %v410_v21 = vpop.xlane.xlu0 %409 }
 0x216   : > { %v411_v22 = vmul.f32 0.015625, %v410_v21 }
 0x218   : > { %v412_v23 = vadd.f32 1e-05, %v411_v22 }
 0x21a   : > { %720 = vrsqrt.f32 %v412_v23 }
 0x224   : > { %v721_v24 = vpop.eup %720 }
 0x225   : > { %v414_v26 = vmul.f32 %v721_v24, %v406_v14 }
 0x227   : > { %v421_v28 = vmul.f32 %v631_v25, %v414_v26 }
 0x229   : > { %v428_v29 = vadd.f32 %v632_v27, %v421_v28 }
 0x22b   : > { %v430_v30 = vmul.f32 0.70710677, %v428_v29  ;;  %v429_v32 = vmul.f32 0.5, %v428_v29 }
 0x22d   : > { %722 = verf.f32 %v430_v30 }
 0x237   : > { %v723_v31 = vpop.eup %722 }
 0x238   : > { %v432_v33 = vadd.f32 1.0, %v723_v31 }
 0x23a   : > { %v433_v34 = vmul.f32 %v432_v33, %v429_v32 }
 0x23c   : > { %v434_v35 = vpack.c.bf16 %v433_v34, %v433_v34 }
 0x23e   : > { %670 = vmatmul.mubr.msk.bf16.vlgmr.msra.gmra.mrb[0].mxu1 %vm400_vm2, %v434_v35 }
 0x311   : > { %v511_v37 = vpop.f32.mrb[0].mxu1 }
 0x312   : > { %v512_v38 = vadd.f32 %v633_v36, %v511_v37  ;;  %v671_v39 = vpop.f32.mrb[1].mxu1 }
 0x313   : > { %v514_v40 = vpop.f32.mrb[2].mxu1 }
 0x314   : > { %v672_v41 = vpop.f32.mrb[3].mxu1  ;;  %v519_v42 = vsel %vm354_vm1, %v512_v38, 0.0 }
 0x315   : > { %520 = vadd.xlane.f32.xlu1 %v519_v42 }
 0x3a2   : > { %v521_v43 = vpop.xlane.xlu1 %520 }
 0x3a3   : > { %v523_v44 = vmul.f32 0.03125, %v521_v43 }
 0x3a5   : > { %v524_v45 = vsub.f32 %v512_v38, %v523_v44 }
 0x3a7   : > { %v525_v46 = vmul.f32 %v524_v45, %v524_v45 }
 0x3a9   : > { %v526_v47 = vsel %vm354_vm1, %v525_v46, 0.0 }
 0x3aa   : > { %527 = vadd.xlane.f32.xlu1 %v526_v47 }
 0x437   : > { %v528_v48 = vpop.xlane.xlu1 %527 }
 0x438   : > { %v529_v49 = vmul.f32 0.03125, %v528_v48 }
 0x43a   : > { %v530_v50 = vadd.f32 1e-05, %v529_v49 }
 0x43c   : > { %724 = vrsqrt.f32 %v530_v50 }
 0x446   : > { %v725_v51 = vpop.eup %724 }
 0x447   : > { %v532_v53 = vmul.f32 %v725_v51, %v524_v45 }
 0x449   : > { %v539_v55 = vmul.f32 %v639_v52, %v532_v53 }
 0x44b   : > { %v546_v56 = vadd.f32 %v640_v54, %v539_v55 }
 0x44d   : > { %547 = vst.msk [vmem:[%s323_s29] sm:$0xff] %vm354_vm1, %v546_v56 }
 0x44e   : > { %739 = shalt.err (!%p736_p3)
}
 0x44f   : > { %s740_s22 = scalar_lea.hbm %s943_s21, 128  ;;  %s744_s29 = scalar_lea.hbm %s995_s9, 256 }
 0x450   : > { %p741_p4 = scmp.ne.s32.totalorder %s943_s21, %s740_s22  ;;  %p745_p9 = scmp.lt.u32.totalorder %s943_s21, %s995_s9 }
 0x451   : > { %p746_p10 = scmp.lt.u32.totalorder %s744_s29, %s740_s22  ;;  %p748_p12 = scmp.lt.u32.totalorder %s740_s22, %s943_s21 }
 0x452   : > { %p742_p7 = pnand %p741_p4, %p881_p5 }
 0x453   : > { %p747_p11 = por %p746_p10, %p745_p9 }
 0x454   : > { %p743_p8 = pneg %p742_p7 }
 0x455   : > { %p749_p13 = por %p748_p12, %p747_p11 }
 0x457   : > { %p750_p0 = pnand %p749_p13, %p743_p8 }
 0x459   : > { %753 = shalt.err (!%p750_p0)
}
 0x45a   : > { %673 = dma.vmem_to_hbm [thread:$0]  (%p881_p5), %s945_s14, 128, %s943_s21, %s549_s24  }
 0x45b PF: > { %p679_p1 = scmp.ge.s32.totalorder %s788_s12, 2  ;;  %s574_s25 = sand.u32 1, %s776_s30  }
 0x45c   : > { %s575_s13 = scalar_lea.sflag [#allocation3], %s574_s25 }
 0x45d   : > { %p676_p2 = pnand %p679_p1, %p885_p6 }
 0x45f   : > { %771 = dma.done.wait (!%p676_p2), %s575_s13, 128  }
 0x460   : > { %773 = vsyncadd (!%p676_p2), %s575_s13, 4294967168  ;;  %p19_p3 = scmp.ge.s32.totalorder %s868_s15, 4   ;;  %s998_s30 = smov %s780_s10 }
 0x461   : > { %s999_s10 = smov %s784_s11  ;;  %s1000_s11 = smov %s879_s18 }
 0x462   : > { %s1001_s12 = smov %s868_s15  ;;  %21 = sbr.rel (!%p19_p3) target bundleno = 3 (0x3), region = 91 }
 0x469   :  { %580 = vsyncpa [#allocation3], 1 }
 0x46a   :  { %582 = vsyncpa [#allocation3 + $0x1], 1 }

</bundles_post_ra>
